<compile_context>
chip_gen: v7x
topology: tpu7x:2x2x1
jax: 0.10.0
libtpu: 0.0.40
codegen_flags: <defaults>
</compile_context>

<pallas_src>
import functools
import math

import jax
import jax.numpy as jnp
import numpy as np
from jax.experimental import pallas as pl
from jax.experimental.pallas import tpu as pltpu


def _round_up(x, m):
    return ((x + m - 1) // m) * m


def _choose_tm(m_pad, block_rows):
    """Largest 16-multiple tile dividing m_pad, preferring >= 2 grid steps."""
    cap = min(block_rows, m_pad)
    tm = 16
    for t in range(16, cap + 1, 16):
        if m_pad % t == 0:
            tm = t
    # v7x has two TensorCores: avoid a single-step grid when we can split.
    if m_pad // tm < 2 and m_pad >= 32:
        for t in range(tm - 16, 15, -16):
            if m_pad % t == 0:
                return t
    return tm


def _self_attention_kernel(x_ref, wq_ref, bq_ref, wk_ref, bk_ref, wv_ref,
                           bv_ref, red_ref, bcast_ref, wf_ref, bf_ref, o_ref,
                           *, heads, dk, pack):
    """One (TM, pack*D) slab of lane-packed rows.

    Lane layouts (within one 128-lane group of `pack` logical rows):
      q/v/k projections : [head, group, d]  /  [head_j, group, d]
      scores / attn     : [head_j, head_i, group]
    """
    f32 = jnp.float32
    bf16 = jnp.bfloat16
    PH = pack * heads           # lanes per head_j slab of scores/attn
    Pdk = pack * dk             # lanes per head_j slab of k/v

    x = x_ref[...]                                               # (TM, W) bf16
    red = red_ref[...]                                           # (W, PH) bf16
    bcast = bcast_ref[...]                                       # (PH, W) bf16

    # --- three separate d_model x d_model projections (bf16 MXU, f32 acc) ---
    q = jnp.dot(x, wq_ref[...], preferred_element_type=f32) + bq_ref[...]
    k = jnp.dot(x, wk_ref[...], preferred_element_type=f32) + bk_ref[...]
    v = jnp.dot(x, wv_ref[...], preferred_element_type=f32) + bv_ref[...]
    q = q.astype(bf16)
    k = k.astype(bf16)
    v = v.astype(bf16)

    # --- scores s[g, i, j] = <q[g,i,:], k[g,j,:]> / sqrt(dk), layout [j,i,g] ---
    # Head-pair expansion is a lane slice + tile (VPU/XLU), not an MXU matmul;
    # only the dk-segmented sum uses a tiny (W x PH) constant matmul.
    s_parts = []
    for j in range(heads):
        k_j = k[:, j * Pdk:(j + 1) * Pdk]                        # (TM, Pdk) [g,d]
        kt = jnp.concatenate([k_j] * heads, axis=-1)             # (TM, W) [i,g,d]
        s_parts.append(jnp.dot(q * kt, red, preferred_element_type=f32))
    s = jnp.concatenate(s_parts, axis=-1) * (1.0 / math.sqrt(dk))   # (TM, H*PH)

    # --- softmax over head_j with a per-(group, head_i) block max ---
    bmax = s[:, 0:PH]
    for j in range(1, heads):
        bmax = jnp.maximum(bmax, s[:, j * PH:(j + 1) * PH])      # (TM, PH)
    exp_s = jnp.exp(s - jnp.concatenate([bmax] * heads, axis=-1))
    den = exp_s[:, 0:PH]
    for j in range(1, heads):
        den = den + exp_s[:, j * PH:(j + 1) * PH]                # (TM, PH), >= 1
    inv = pl.reciprocal(den, approx=True)
    attn = (exp_s * jnp.concatenate([inv] * heads, axis=-1)).astype(bf16)

    # --- out[g,i,d] = sum_j attn[g,i,j] * v[g,j,d], layout [i,g,d] ---
    acc = None
    for j in range(heads):
        a_j = attn[:, j * PH:(j + 1) * PH]                       # (TM, PH) [i,g]
        ad = jnp.dot(a_j, bcast, preferred_element_type=f32)     # (TM, W) [i,g,d]
        v_j = v[:, j * Pdk:(j + 1) * Pdk]                        # (TM, Pdk) [g,d]
        vt = jnp.concatenate([v_j] * heads, axis=-1)             # (TM, W) [i,g,d]
        term = ad * vt
        acc = term if acc is None else acc + term

    # --- final d_model x d_model linear (head_j sum already folded above) ---
    out = jnp.dot(acc.astype(bf16), wf_ref[...],
                  preferred_element_type=f32) + bf_ref[...]
    o_ref[...] = out.astype(o_ref.dtype)


def _build_constants(params, heads, dk, pack):
    """Fold the per-row projections into block-diagonal, lane-permuted constant
    matrices (built once, host-side)."""
    wq, bq, wk, bk, wv, bv, wf, bf = [np.asarray(p, np.float32) for p in params]
    D = heads * dk
    width = pack * D
    PH = pack * heads
    Pdk = pack * dk

    # Destination lane order [head, group, d] <- source lane g*D + head*dk + d
    # of the natural block-diagonal [group, d_model] layout.
    i_ix, g_ix, d_ix = np.meshgrid(np.arange(heads), np.arange(pack),
                                   np.arange(dk), indexing="ij")
    src_igd = (g_ix * D + i_ix * dk + d_ix).reshape(-1)          # (width,)

    eye_p = np.eye(pack, dtype=np.float32)

    def proj(w, b):
        wp = np.kron(eye_p, w)[:, src_igd]                       # (width, width)
        bp = np.tile(b.reshape(-1), pack)[src_igd][None, :]      # (1, width)
        return wp, bp

    wq_p, bq_p = proj(wq, bq)
    wk_p, bk_p = proj(wk, bk)
    wv_p, bv_p = proj(wv, bv)

    # red: segmented sum over d, [head,group,d] -> [head,group]; bcast = red^T.
    rows = np.arange(width)
    red = np.zeros((width, PH), np.float32)
    red[rows, (rows // Pdk) * pack + (rows % Pdk) // dk] = 1.0
    bcast = red.T.copy()

    # Final linear with rows permuted to accept the [head, group, d] layout;
    # output is the packed [group, d_model] layout (block-diagonal over groups).
    wf_p = np.kron(eye_p, wf)[src_igd, :]                        # (width, width)
    bf_p = np.tile(bf.reshape(-1), pack)[None, :]                # (1, width)

    bf16 = jnp.bfloat16
    return (jnp.asarray(wq_p, bf16), jnp.asarray(bq_p, jnp.float32),
            jnp.asarray(wk_p, bf16), jnp.asarray(bk_p, jnp.float32),
            jnp.asarray(wv_p, bf16), jnp.asarray(bv_p, jnp.float32),
            jnp.asarray(red, bf16), jnp.asarray(bcast, bf16),
            jnp.asarray(wf_p, bf16), jnp.asarray(bf_p, jnp.float32))


def self_attention_forward(x, params, heads, *, block_rows=1024):
    """x: (B, S, N, D) float32. Returns (B, S, N, D) float32."""
    B, S, N, D = x.shape
    assert D % heads == 0
    dk = D // heads
    M = B * S * N

    # Lane packing: `pack` logical rows side-by-side on the 128-lane axis.
    pack = 128 // D if (D <= 128 and 128 % D == 0) else 1
    width = pack * D

    consts = _build_constants(params, heads, dk, pack)

    m_packed = pl.cdiv(M, pack)
    m_pad = _round_up(m_packed, 16)
    tm = _choose_tm(m_pad, block_rows)

    # bf16 HBM stream for the input (half the read of f32).
    x2 = x.reshape(M, D).astype(jnp.bfloat16)
    extra = m_pad * pack - M
    if extra:
        # Ragged tail only when M doesn't already align; padded rows have zero
        # scores -> uniform softmax -> finite outputs that are discarded.
        x2 = jnp.concatenate([x2, jnp.zeros((extra, D), x2.dtype)], axis=0)
    xp = x2.reshape(m_pad, width)

    kernel = functools.partial(_self_attention_kernel,
                               heads=heads, dk=dk, pack=pack)
    row_spec = pl.BlockSpec((tm, width), lambda i: (i, 0))
    out_spec = pl.BlockSpec((tm, width), lambda i: (i, 0))

    def const_spec(arr):
        return pl.BlockSpec(arr.shape, lambda i: (0, 0))

    out = pl.pallas_call(
        kernel,
        out_shape=jax.ShapeDtypeStruct((m_pad, width), jnp.float32),
        grid_spec=pltpu.PrefetchScalarGridSpec(
            num_scalar_prefetch=0,
            grid=(m_pad // tm,),
            in_specs=[row_spec] + [const_spec(c) for c in consts],
            out_specs=out_spec,
        ),
        compiler_params=pltpu.CompilerParams(
            dimension_semantics=("parallel",),
            vmem_limit_bytes=48 * 1024 * 1024,
        ),
    )(xp, *consts)

    out = out.reshape(m_pad * pack, D)[:M]
    return out.reshape(B, S, N, D)


def _init_linear(key, d_in, d_out):
    """Deterministic nn.Linear-style init; weight stored as (in, out)."""
    kw, kb = jax.random.split(key)
    bound = 1.0 / jnp.sqrt(jnp.float32(d_in))
    w = jax.random.uniform(kw, (d_in, d_out), jnp.float32, -bound, bound)
    b = jax.random.uniform(kb, (1, d_out), jnp.float32, -bound, bound)
    return w, b


def _reference(x, params, heads):
    """Plain-JAX replica of the PyTorch forward (eval-mode), f32 throughout."""
    wq, bq, wk, bk, wv, bv, wf, bf = params
    B, S, N, D = x.shape
    dk = D // heads
    q = (x @ wq + bq).reshape(B, S, N, heads, dk)
    k = (x @ wk + bk).reshape(B, S, N, heads, dk)
    v = (x @ wv + bv).reshape(B, S, N, heads, dk)
    a = jnp.einsum('bsnid,bsnjd->bsnij', q, k) / jnp.sqrt(jnp.float32(dk))
    p = jax.nn.softmax(a, axis=-1)
    o = jnp.einsum('bsnij,bsnjd->bsnid', p, v).reshape(B, S, N, D)
    return o @ wf + bf


if __name__ == "__main__":
    B, S, N, D, HEADS = 2, 8, 8, 32, 4

    key = jax.random.PRNGKey(0)
    kx, kq, kk, kv, kf = jax.random.split(key, 5)

    x = jax.random.normal(kx, (B, S, N, D), jnp.float32)
    wq, bq = _init_linear(kq, D, D)
    wk, bk = _init_linear(kk, D, D)
    wv, bv = _init_linear(kv, D, D)
    wf, bf = _init_linear(kf, D, D)
    params = (wq, bq, wk, bk, wv, bv, wf, bf)

    out = self_attention_forward(x, params, HEADS)
    out = jax.block_until_ready(out)

    ref = _reference(x, params, HEADS)
    assert out.shape == (B, S, N, D)
    # Tolerance sized for the bf16 data path (bf16 x / weights, f32 accumulate).
    assert jnp.allclose(out, ref, atol=3e-2, rtol=3e-2), "mismatch vs reference"

    print("KERNEL_OK")
</pallas_src>

<mosaic_0001>
module attributes {stable_mosaic.version = 11 : i64} {
  func.func @_self_attention_kernel(%arg0: i32, %arg1: memref<16x128xbf16, #tpu.memory_space<vmem>>, %arg2: memref<128x128xbf16, #tpu.memory_space<vmem>>, %arg3: memref<1x128xf32, #tpu.memory_space<vmem>>, %arg4: memref<128x128xbf16, #tpu.memory_space<vmem>>, %arg5: memref<1x128xf32, #tpu.memory_space<vmem>>, %arg6: memref<128x128xbf16, #tpu.memory_space<vmem>>, %arg7: memref<1x128xf32, #tpu.memory_space<vmem>>, %arg8: memref<128x16xbf16, #tpu.memory_space<vmem>>, %arg9: memref<16x128xbf16, #tpu.memory_space<vmem>>, %arg10: memref<128x128xbf16, #tpu.memory_space<vmem>>, %arg11: memref<1x128xf32, #tpu.memory_space<vmem>>, %arg12: memref<16x128xf32, #tpu.memory_space<vmem>>) attributes {dimension_semantics = [#tpu.dimension_semantics<parallel>], iteration_bounds = array<i64: 2>, scalar_prefetch = 0 : i64, scratch_operands = 0 : i64, tpu.core_type = #tpu.core_type<tc>, window_params = [{transform_indices = @transform_0, window_bounds = array<i64: 16, 128>}, {pipeline_mode = #tpu.pipeline_mode<synchronous>, transform_indices = @transform_1, window_bounds = array<i64: 128, 128>}, {pipeline_mode = #tpu.pipeline_mode<synchronous>, transform_indices = @transform_2, window_bounds = array<i64: 1, 128>}, {pipeline_mode = #tpu.pipeline_mode<synchronous>, transform_indices = @transform_3, window_bounds = array<i64: 128, 128>}, {pipeline_mode = #tpu.pipeline_mode<synchronous>, transform_indices = @transform_4, window_bounds = array<i64: 1, 128>}, {pipeline_mode = #tpu.pipeline_mode<synchronous>, transform_indices = @transform_5, window_bounds = array<i64: 128, 128>}, {pipeline_mode = #tpu.pipeline_mode<synchronous>, transform_indices = @transform_6, window_bounds = array<i64: 1, 128>}, {pipeline_mode = #tpu.pipeline_mode<synchronous>, transform_indices = @transform_7, window_bounds = array<i64: 128, 16>}, {pipeline_mode = #tpu.pipeline_mode<synchronous>, transform_indices = @transform_8, window_bounds = array<i64: 16, 128>}, {pipeline_mode = #tpu.pipeline_mode<synchronous>, transform_indices = @transform_9, window_bounds = array<i64: 128, 128>}, {pipeline_mode = #tpu.pipeline_mode<synchronous>, transform_indices = @transform_10, window_bounds = array<i64: 1, 128>}, {transform_indices = @transform_11, window_bounds = array<i64: 16, 128>}]} {
    %c0 = arith.constant 0 : index
    %c0_0 = arith.constant 0 : index
    %0 = vector.load %arg1[%c0, %c0_0] : memref<16x128xbf16, #tpu.memory_space<vmem>>, vector<16x128xbf16>
    %c0_1 = arith.constant 0 : index
    %c0_2 = arith.constant 0 : index
    %1 = vector.load %arg8[%c0_1, %c0_2] : memref<128x16xbf16, #tpu.memory_space<vmem>>, vector<128x16xbf16>
    %c0_3 = arith.constant 0 : index
    %c0_4 = arith.constant 0 : index
    %2 = vector.load %arg9[%c0_3, %c0_4] : memref<16x128xbf16, #tpu.memory_space<vmem>>, vector<16x128xbf16>
    %c0_5 = arith.constant 0 : index
    %c0_6 = arith.constant 0 : index
    %3 = vector.load %arg2[%c0_5, %c0_6] : memref<128x128xbf16, #tpu.memory_space<vmem>>, vector<128x128xbf16>
    %cst = arith.constant dense<0.000000e+00> : vector<16x128xf32>
    %4 = tpu.matmul %0, %3, %cst {dimension_numbers = #tpu.dot_dimension_numbers<[1], [0], [0], [1], [0, 0, 1, 1], [], []>} : vector<16x128xbf16>, vector<128x128xbf16>, vector<16x128xf32> -> vector<16x128xf32>
    %c0_7 = arith.constant 0 : index
    %c0_8 = arith.constant 0 : index
    %5 = vector.load %arg3[%c0_7, %c0_8] : memref<1x128xf32, #tpu.memory_space<vmem>>, vector<1x128xf32>
    %6 = vector.broadcast %5 : vector<1x128xf32> to vector<16x128xf32>
    %7 = arith.addf %4, %6 : vector<16x128xf32>
    %c0_9 = arith.constant 0 : index
    %c0_10 = arith.constant 0 : index
    %8 = vector.load %arg4[%c0_9, %c0_10] : memref<128x128xbf16, #tpu.memory_space<vmem>>, vector<128x128xbf16>
    %cst_11 = arith.constant dense<0.000000e+00> : vector<16x128xf32>
    %9 = tpu.matmul %0, %8, %cst_11 {dimension_numbers = #tpu.dot_dimension_numbers<[1], [0], [0], [1], [0, 0, 1, 1], [], []>} : vector<16x128xbf16>, vector<128x128xbf16>, vector<16x128xf32> -> vector<16x128xf32>
    %c0_12 = arith.constant 0 : index
    %c0_13 = arith.constant 0 : index
    %10 = vector.load %arg5[%c0_12, %c0_13] : memref<1x128xf32, #tpu.memory_space<vmem>>, vector<1x128xf32>
    %11 = vector.broadcast %10 : vector<1x128xf32> to vector<16x128xf32>
    %12 = arith.addf %9, %11 : vector<16x128xf32>
    %c0_14 = arith.constant 0 : index
    %c0_15 = arith.constant 0 : index
    %13 = vector.load %arg6[%c0_14, %c0_15] : memref<128x128xbf16, #tpu.memory_space<vmem>>, vector<128x128xbf16>
    %cst_16 = arith.constant dense<0.000000e+00> : vector<16x128xf32>
    %14 = tpu.matmul %0, %13, %cst_16 {dimension_numbers = #tpu.dot_dimension_numbers<[1], [0], [0], [1], [0, 0, 1, 1], [], []>} : vector<16x128xbf16>, vector<128x128xbf16>, vector<16x128xf32> -> vector<16x128xf32>
    %c0_17 = arith.constant 0 : index
    %c0_18 = arith.constant 0 : index
    %15 = vector.load %arg7[%c0_17, %c0_18] : memref<1x128xf32, #tpu.memory_space<vmem>>, vector<1x128xf32>
    %16 = vector.broadcast %15 : vector<1x128xf32> to vector<16x128xf32>
    %17 = arith.addf %14, %16 : vector<16x128xf32>
    %18 = arith.truncf %7 : vector<16x128xf32> to vector<16x128xbf16>
    %19 = arith.truncf %12 : vector<16x128xf32> to vector<16x128xbf16>
    %20 = arith.truncf %17 : vector<16x128xf32> to vector<16x128xbf16>
    %21 = vector.extract_strided_slice %19 {offsets = [0, 0], sizes = [16, 32], strides = [1, 1]} : vector<16x128xbf16> to vector<16x32xbf16>
    %22 = tpu.concatenate %21, %21, %21, %21 in 1 : vector<16x32xbf16>, vector<16x32xbf16>, vector<16x32xbf16>, vector<16x32xbf16> -> vector<16x128xbf16>
    %23 = arith.mulf %18, %22 : vector<16x128xbf16>
    %cst_19 = arith.constant dense<0.000000e+00> : vector<16x16xf32>
    %24 = tpu.matmul %23, %1, %cst_19 {dimension_numbers = #tpu.dot_dimension_numbers<[1], [0], [0], [1], [0, 0, 1, 1], [], []>} : vector<16x128xbf16>, vector<128x16xbf16>, vector<16x16xf32> -> vector<16x16xf32>
    %25 = vector.extract_strided_slice %19 {offsets = [0, 32], sizes = [16, 32], strides = [1, 1]} : vector<16x128xbf16> to vector<16x32xbf16>
    %26 = tpu.concatenate %25, %25, %25, %25 in 1 : vector<16x32xbf16>, vector<16x32xbf16>, vector<16x32xbf16>, vector<16x32xbf16> -> vector<16x128xbf16>
    %27 = arith.mulf %18, %26 : vector<16x128xbf16>
    %cst_20 = arith.constant dense<0.000000e+00> : vector<16x16xf32>
    %28 = tpu.matmul %27, %1, %cst_20 {dimension_numbers = #tpu.dot_dimension_numbers<[1], [0], [0], [1], [0, 0, 1, 1], [], []>} : vector<16x128xbf16>, vector<128x16xbf16>, vector<16x16xf32> -> vector<16x16xf32>
    %29 = vector.extract_strided_slice %19 {offsets = [0, 64], sizes = [16, 32], strides = [1, 1]} : vector<16x128xbf16> to vector<16x32xbf16>
    %30 = tpu.concatenate %29, %29, %29, %29 in 1 : vector<16x32xbf16>, vector<16x32xbf16>, vector<16x32xbf16>, vector<16x32xbf16> -> vector<16x128xbf16>
    %31 = arith.mulf %18, %30 : vector<16x128xbf16>
    %cst_21 = arith.constant dense<0.000000e+00> : vector<16x16xf32>
    %32 = tpu.matmul %31, %1, %cst_21 {dimension_numbers = #tpu.dot_dimension_numbers<[1], [0], [0], [1], [0, 0, 1, 1], [], []>} : vector<16x128xbf16>, vector<128x16xbf16>, vector<16x16xf32> -> vector<16x16xf32>
    %33 = vector.extract_strided_slice %19 {offsets = [0, 96], sizes = [16, 32], strides = [1, 1]} : vector<16x128xbf16> to vector<16x32xbf16>
    %34 = tpu.concatenate %33, %33, %33, %33 in 1 : vector<16x32xbf16>, vector<16x32xbf16>, vector<16x32xbf16>, vector<16x32xbf16> -> vector<16x128xbf16>
    %35 = arith.mulf %18, %34 : vector<16x128xbf16>
    %cst_22 = arith.constant dense<0.000000e+00> : vector<16x16xf32>
    %36 = tpu.matmul %35, %1, %cst_22 {dimension_numbers = #tpu.dot_dimension_numbers<[1], [0], [0], [1], [0, 0, 1, 1], [], []>} : vector<16x128xbf16>, vector<128x16xbf16>, vector<16x16xf32> -> vector<16x16xf32>
    %37 = tpu.concatenate %24, %28, %32, %36 in 1 : vector<16x16xf32>, vector<16x16xf32>, vector<16x16xf32>, vector<16x16xf32> -> vector<16x64xf32>
    %cst_23 = arith.constant 0.353553385 : f32
    %38 = vector.broadcast %cst_23 : f32 to vector<16x64xf32>
    %39 = arith.mulf %37, %38 : vector<16x64xf32>
    %40 = vector.extract_strided_slice %39 {offsets = [0, 0], sizes = [16, 16], strides = [1, 1]} : vector<16x64xf32> to vector<16x16xf32>
    %41 = vector.extract_strided_slice %39 {offsets = [0, 16], sizes = [16, 16], strides = [1, 1]} : vector<16x64xf32> to vector<16x16xf32>
    %42 = arith.maximumf %40, %41 : vector<16x16xf32>
    %43 = vector.extract_strided_slice %39 {offsets = [0, 32], sizes = [16, 16], strides = [1, 1]} : vector<16x64xf32> to vector<16x16xf32>
    %44 = arith.maximumf %42, %43 : vector<16x16xf32>
    %45 = vector.extract_strided_slice %39 {offsets = [0, 48], sizes = [16, 16], strides = [1, 1]} : vector<16x64xf32> to vector<16x16xf32>
    %46 = arith.maximumf %44, %45 : vector<16x16xf32>
    %47 = tpu.concatenate %46, %46, %46, %46 in 1 : vector<16x16xf32>, vector<16x16xf32>, vector<16x16xf32>, vector<16x16xf32> -> vector<16x64xf32>
    %48 = arith.subf %39, %47 : vector<16x64xf32>
    %49 = math.exp %48 : vector<16x64xf32>
    %50 = vector.extract_strided_slice %49 {offsets = [0, 0], sizes = [16, 16], strides = [1, 1]} : vector<16x64xf32> to vector<16x16xf32>
    %51 = vector.extract_strided_slice %49 {offsets = [0, 16], sizes = [16, 16], strides = [1, 1]} : vector<16x64xf32> to vector<16x16xf32>
    %52 = arith.addf %50, %51 : vector<16x16xf32>
    %53 = vector.extract_strided_slice %49 {offsets = [0, 32], sizes = [16, 16], strides = [1, 1]} : vector<16x64xf32> to vector<16x16xf32>
    %54 = arith.addf %52, %53 : vector<16x16xf32>
    %55 = vector.extract_strided_slice %49 {offsets = [0, 48], sizes = [16, 16], strides = [1, 1]} : vector<16x64xf32> to vector<16x16xf32>
    %56 = arith.addf %54, %55 : vector<16x16xf32>
    %57 = tpu.reciprocal %56 {approx = true} : vector<16x16xf32> -> vector<16x16xf32>
    %58 = tpu.concatenate %57, %57, %57, %57 in 1 : vector<16x16xf32>, vector<16x16xf32>, vector<16x16xf32>, vector<16x16xf32> -> vector<16x64xf32>
    %59 = arith.mulf %49, %58 : vector<16x64xf32>
    %60 = arith.truncf %59 : vector<16x64xf32> to vector<16x64xbf16>
    %61 = vector.extract_strided_slice %60 {offsets = [0, 0], sizes = [16, 16], strides = [1, 1]} : vector<16x64xbf16> to vector<16x16xbf16>
    %cst_24 = arith.constant dense<0.000000e+00> : vector<16x128xf32>
    %62 = tpu.matmul %61, %2, %cst_24 {dimension_numbers = #tpu.dot_dimension_numbers<[1], [0], [0], [1], [0, 0, 1, 1], [], []>} : vector<16x16xbf16>, vector<16x128xbf16>, vector<16x128xf32> -> vector<16x128xf32>
    %63 = vector.extract_strided_slice %20 {offsets = [0, 0], sizes = [16, 32], strides = [1, 1]} : vector<16x128xbf16> to vector<16x32xbf16>
    %64 = tpu.concatenate %63, %63, %63, %63 in 1 : vector<16x32xbf16>, vector<16x32xbf16>, vector<16x32xbf16>, vector<16x32xbf16> -> vector<16x128xbf16>
    %65 = arith.extf %64 : vector<16x128xbf16> to vector<16x128xf32>
    %66 = arith.mulf %62, %65 : vector<16x128xf32>
    %67 = vector.extract_strided_slice %60 {offsets = [0, 16], sizes = [16, 16], strides = [1, 1]} : vector<16x64xbf16> to vector<16x16xbf16>
    %cst_25 = arith.constant dense<0.000000e+00> : vector<16x128xf32>
    %68 = tpu.matmul %67, %2, %cst_25 {dimension_numbers = #tpu.dot_dimension_numbers<[1], [0], [0], [1], [0, 0, 1, 1], [], []>} : vector<16x16xbf16>, vector<16x128xbf16>, vector<16x128xf32> -> vector<16x128xf32>
    %69 = vector.extract_strided_slice %20 {offsets = [0, 32], sizes = [16, 32], strides = [1, 1]} : vector<16x128xbf16> to vector<16x32xbf16>
    %70 = tpu.concatenate %69, %69, %69, %69 in 1 : vector<16x32xbf16>, vector<16x32xbf16>, vector<16x32xbf16>, vector<16x32xbf16> -> vector<16x128xbf16>
    %71 = arith.extf %70 : vector<16x128xbf16> to vector<16x128xf32>
    %72 = arith.mulf %68, %71 : vector<16x128xf32>
    %73 = arith.addf %66, %72 : vector<16x128xf32>
    %74 = vector.extract_strided_slice %60 {offsets = [0, 32], sizes = [16, 16], strides = [1, 1]} : vector<16x64xbf16> to vector<16x16xbf16>
    %cst_26 = arith.constant dense<0.000000e+00> : vector<16x128xf32>
    %75 = tpu.matmul %74, %2, %cst_26 {dimension_numbers = #tpu.dot_dimension_numbers<[1], [0], [0], [1], [0, 0, 1, 1], [], []>} : vector<16x16xbf16>, vector<16x128xbf16>, vector<16x128xf32> -> vector<16x128xf32>
    %76 = vector.extract_strided_slice %20 {offsets = [0, 64], sizes = [16, 32], strides = [1, 1]} : vector<16x128xbf16> to vector<16x32xbf16>
    %77 = tpu.concatenate %76, %76, %76, %76 in 1 : vector<16x32xbf16>, vector<16x32xbf16>, vector<16x32xbf16>, vector<16x32xbf16> -> vector<16x128xbf16>
    %78 = arith.extf %77 : vector<16x128xbf16> to vector<16x128xf32>
    %79 = arith.mulf %75, %78 : vector<16x128xf32>
    %80 = arith.addf %73, %79 : vector<16x128xf32>
    %81 = vector.extract_strided_slice %60 {offsets = [0, 48], sizes = [16, 16], strides = [1, 1]} : vector<16x64xbf16> to vector<16x16xbf16>
    %cst_27 = arith.constant dense<0.000000e+00> : vector<16x128xf32>
    %82 = tpu.matmul %81, %2, %cst_27 {dimension_numbers = #tpu.dot_dimension_numbers<[1], [0], [0], [1], [0, 0, 1, 1], [], []>} : vector<16x16xbf16>, vector<16x128xbf16>, vector<16x128xf32> -> vector<16x128xf32>
    %83 = vector.extract_strided_slice %20 {offsets = [0, 96], sizes = [16, 32], strides = [1, 1]} : vector<16x128xbf16> to vector<16x32xbf16>
    %84 = tpu.concatenate %83, %83, %83, %83 in 1 : vector<16x32xbf16>, vector<16x32xbf16>, vector<16x32xbf16>, vector<16x32xbf16> -> vector<16x128xbf16>
    %85 = arith.extf %84 : vector<16x128xbf16> to vector<16x128xf32>
    %86 = arith.mulf %82, %85 : vector<16x128xf32>
    %87 = arith.addf %80, %86 : vector<16x128xf32>
    %88 = arith.truncf %87 : vector<16x128xf32> to vector<16x128xbf16>
    %c0_28 = arith.constant 0 : index
    %c0_29 = arith.constant 0 : index
    %89 = vector.load %arg10[%c0_28, %c0_29] : memref<128x128xbf16, #tpu.memory_space<vmem>>, vector<128x128xbf16>
    %cst_30 = arith.constant dense<0.000000e+00> : vector<16x128xf32>
    %90 = tpu.matmul %88, %89, %cst_30 {dimension_numbers = #tpu.dot_dimension_numbers<[1], [0], [0], [1], [0, 0, 1, 1], [], []>} : vector<16x128xbf16>, vector<128x128xbf16>, vector<16x128xf32> -> vector<16x128xf32>
    %c0_31 = arith.constant 0 : index
    %c0_32 = arith.constant 0 : index
    %91 = vector.load %arg11[%c0_31, %c0_32] : memref<1x128xf32, #tpu.memory_space<vmem>>, vector<1x128xf32>
    %92 = vector.broadcast %91 : vector<1x128xf32> to vector<16x128xf32>
    %93 = arith.addf %90, %92 : vector<16x128xf32>
    %c0_33 = arith.constant 0 : index
    %c0_34 = arith.constant 0 : index
    %94 = vector.load %arg12[%c0_33, %c0_34] : memref<16x128xf32, #tpu.memory_space<vmem>>, vector<16x128xf32>
    tpu.vector_store %arg12[%c0_33, %c0_34], %93 {strides = array<i32>} : memref<16x128xf32, #tpu.memory_space<vmem>>, vector<16x128xf32>,
    return
  }
  func.func @transform_0(%arg0: i32) -> (i32, i32) {
    %c0_i32 = arith.constant 0 : i32
    %c0_i32_0 = arith.constant 0 : i32
    return %arg0, %c0_i32 : i32, i32
  }
  func.func @transform_1(%arg0: i32) -> (i32, i32) {
    %c0_i32 = arith.constant 0 : i32
    %c0_i32_0 = arith.constant 0 : i32
    %c0_i32_1 = arith.constant 0 : i32
    return %c0_i32, %c0_i32_0 : i32, i32
  }
  func.func @transform_2(%arg0: i32) -> (i32, i32) {
    %c0_i32 = arith.constant 0 : i32
    %c0_i32_0 = arith.constant 0 : i32
    %c0_i32_1 = arith.constant 0 : i32
    return %c0_i32, %c0_i32_0 : i32, i32
  }
  func.func @transform_3(%arg0: i32) -> (i32, i32) {
    %c0_i32 = arith.constant 0 : i32
    %c0_i32_0 = arith.constant 0 : i32
    %c0_i32_1 = arith.constant 0 : i32
    return %c0_i32, %c0_i32_0 : i32, i32
  }
  func.func @transform_4(%arg0: i32) -> (i32, i32) {
    %c0_i32 = arith.constant 0 : i32
    %c0_i32_0 = arith.constant 0 : i32
    %c0_i32_1 = arith.constant 0 : i32
    return %c0_i32, %c0_i32_0 : i32, i32
  }
  func.func @transform_5(%arg0: i32) -> (i32, i32) {
    %c0_i32 = arith.constant 0 : i32
    %c0_i32_0 = arith.constant 0 : i32
    %c0_i32_1 = arith.constant 0 : i32
    return %c0_i32, %c0_i32_0 : i32, i32
  }
  func.func @transform_6(%arg0: i32) -> (i32, i32) {
    %c0_i32 = arith.constant 0 : i32
    %c0_i32_0 = arith.constant 0 : i32
    %c0_i32_1 = arith.constant 0 : i32
    return %c0_i32, %c0_i32_0 : i32, i32
  }
  func.func @transform_7(%arg0: i32) -> (i32, i32) {
    %c0_i32 = arith.constant 0 : i32
    %c0_i32_0 = arith.constant 0 : i32
    %c0_i32_1 = arith.constant 0 : i32
    return %c0_i32, %c0_i32_0 : i32, i32
  }
  func.func @transform_8(%arg0: i32) -> (i32, i32) {
    %c0_i32 = arith.constant 0 : i32
    %c0_i32_0 = arith.constant 0 : i32
    %c0_i32_1 = arith.constant 0 : i32
    return %c0_i32, %c0_i32_0 : i32, i32
  }
  func.func @transform_9(%arg0: i32) -> (i32, i32) {
    %c0_i32 = arith.constant 0 : i32
    %c0_i32_0 = arith.constant 0 : i32
    %c0_i32_1 = arith.constant 0 : i32
    return %c0_i32, %c0_i32_0 : i32, i32
  }
  func.func @transform_10(%arg0: i32) -> (i32, i32) {
    %c0_i32 = arith.constant 0 : i32
    %c0_i32_0 = arith.constant 0 : i32
    %c0_i32_1 = arith.constant 0 : i32
    return %c0_i32, %c0_i32_0 : i32, i32
  }
  func.func @transform_11(%arg0: i32) -> (i32, i32) {
    %c0_i32 = arith.constant 0 : i32
    %c0_i32_0 = arith.constant 0 : i32
    return %arg0, %c0_i32 : i32, i32
  }
}

</mosaic_0001>

<bundles_post_ra>
// kernel: tpu_custom_call.1
= control target key start
LH: loop header
LB: loop body
LE: loop exit
PB: predicated region body
PF: predicated region fallthrough
CT: control target
= control target key end

     0   :  { %s3012_s0 = inlined_call_operand.hbm [shape: bf16[32,128], index: 0, kind: input, shape index: {}]   ;;  %s3013_s1 = inlined_call_operand.vmem [shape: bf16[128,128], index: 1, kind: input, shape index: {}]   ;;  %s3014_s2 = inlined_call_operand.vmem [shape: f32[1,128], index: 2, kind: input, shape index: {}]   ;;  %s3015_s3 = inlined_call_operand.hbm [shape: bf16[128,128], index: 3, kind: input, shape index: {}]   ;;  %s3016_s4 = inlined_call_operand.vmem [shape: f32[1,128], index: 4, kind: input, shape index: {}]   ;;  %s3017_s5 = inlined_call_operand.hbm [shape: bf16[128,128], index: 5, kind: input, shape index: {}]   ;;  %s3018_s6 = inlined_call_operand.vmem [shape: f32[1,128], index: 6, kind: input, shape index: {}]   ;;  %s3019_s7 = inlined_call_operand.vmem [shape: bf16[128,16], index: 7, kind: input, shape index: {}]   ;;  %s3020_s8 = inlined_call_operand.vmem [shape: bf16[16,128], index: 8, kind: input, shape index: {}]   ;;  %s3021_s9 = inlined_call_operand.hbm [shape: bf16[128,128], index: 9, kind: input, shape index: {}]   ;;  %s3022_s10 = inlined_call_operand.vmem [shape: f32[1,128], index: 10, kind: input, shape index: {}]   ;;  %s3023_s11 = inlined_call_operand.hbm [shape: f32[32,128], index: 11, kind: output, shape index: {}]  }
   0x1   :  { %3030 = sst [smem:[#allocation17_spill]] %s3020_s8 }
   0x2   :  { %3031 = sst [smem:[#allocation18_spill]] %s3022_s10 }
   0x3   :  { %3032 = sst [smem:[#allocation19_spill]] %s3023_s11 }
   0x4   :  { %16 = vsyncpa [#allocation3], 0 }
   0x5   :  { %18 = vsyncpa [#allocation3 + $0x1], 0 }
   0x6   :  { %19 = vsyncpa [#allocation6], 0 }
   0x7   :  { %20 = vsyncpa [#allocation9], 0 }
   0x8   :  { %21 = vsyncpa [#allocation4], 0 }
   0x9   :  { %23 = vsyncpa [#allocation4 + $0x1], 0  ;;  %s2425_s17 = smov 0   ;;  %s2427_s18 = smov 0  }
   0xa   :  { %s2429_s19 = smov 0   ;;  %s2431_s20 = smov 0  }
   0xb LB: > { %3033 = sst [smem:[#allocation15_spill]] %s2333_s17  ;;  %s2446_s21 = sadd.s32 4294967295, %s2345_s20   ;;  %s2345_s20 = sphi %s2431_s20, %s3059_s20   ;;  %s2341_s19 = sphi %s2429_s19, %s3058_s19   ;;  %s2337_s18 = sphi %s2427_s18, %s3057_s18   ;;  %s2333_s17 = sphi %s2425_s17, %s3056_s17  }
   0xc   : > { %s1681_s22 = sadd.s32 4294967294, %s2345_s20   ;;  %p49_p0 = scmp.ne.s32.totalorder %s2337_s18, %s2333_s17 }
   0xd   : > { %p3025_p1 = scmp.eq.s32.totalorder %s2446_s21, 0  ;;  %p289_p3 = scmp.eq.s32.totalorder %s1681_s22, 1 }
   0xe   : > { %p1682_p5 = scmp.ge.s32.totalorder %s2345_s20, 1  ;;  %p296_p7 = scmp.lt.s32.totalorder %s2345_s20, 3 }
   0xf   : > { %p2455_p4 = por %p3025_p1, %p49_p0  ;;  %p2460_p6 = por %p289_p3, %p49_p0 }
  0x10   : > { %p2465_p8 = pnand %p1682_p5, %p296_p7  ;;  %s2347_s26 = smov [#allocation5]  }
  0x11   : > { %s3034_s23 = scalar_select %p2455_p4, 1, 0 }
  0x12   : > { %s3035_s24 = scalar_select %p2460_p6, 1, 0 }
  0x13   : > { %s3037_s25 = scalar_select %p2465_p8, 1, 0 }
  0x14   : > { %3036 = sst [smem:[#allocation16_spill]] %s3035_s24  ;;  %s314_s27 = sshll.u32 %s2347_s26, 4  ;;  %s2469_s27 = int_to_ptr.vmem [resolvable:$true] %s314_s27 }
  0x15   : > { %p2033_p9 = pneg %p2465_p8  ;;  %s2348_s29 = smov [#allocation7]  }
  0x16   : > { %s330_s30 = sshll.u32 %s2348_s29, 4  ;;  %s2349_s12 = smov [#allocation8]   ;;  %s2480_s30 = int_to_ptr.vmem [resolvable:$true] %s330_s30 }
  0x17   : > { %p2476_p11 = pnand %p2033_p9, %p3025_p1  ;;  %s2482_s13 = sshll.u32 %s2349_s12, 4  ;;  %s353_s13 = int_to_ptr.vmem [resolvable:$true] %s2482_s13 }
  0x18   : > { %s2157_s16 = scalar_lea.hbm %s3015_s3, 1024 }
  0x19   : > { %p2158_p12 = scmp.ne.s32.totalorder %s3015_s3, %s2157_s16  ;;  %p2492_p13 = pneg %p2476_p11 }
  0x1a   : > { %p2164_p5 = scmp.lt.u32.totalorder %s2157_s16, %s3015_s3 }
  0x1b   : > { %p2160_p0 = pnand %p2492_p13, %p2158_p12 }
  0x1d   : > { %p2161_p3 = pneg %p2160_p0 }
  0x1f   : > { %p2166_p7 = pnand %p2164_p5, %p2161_p3 }
  0x21   : > { %2169 = shalt.err (!%p2166_p7)
}
  0x22   : > { %s2170_s14 = scalar_lea.vmem %s2469_s27, 1024  ;;  %p2178_p2 = scmp.lt.s32.totalorder %s2469_s27, %s2469_s27 }
  0x23   : > { %p2171_p9 = scmp.ne.s32.totalorder %s2469_s27, %s2170_s14  ;;  %p2179_p6 = scmp.lt.s32.totalorder %s2170_s14, %s2170_s14 }
  0x25   : > { %p2173_p10 = pnand %p2171_p9, %p2492_p13  ;;  %p2180_p12 = por %p2179_p6, %p2178_p2 }
  0x27   : > { %p2174_p1 = pneg %p2173_p10 }
  0x29   : > { %p2181_p0 = pnand %p2180_p12, %p2174_p1 }
  0x2b   : > { %2184 = shalt.err (!%p2181_p0)
}
  0x2c   : > { %s2350_s15 = smov 64   ;;  %s2351_s16 = smov 4  }
  0x2d   : > { %2036 = dma.hbm_to_vmem [thread:$0]  (!%p2476_p11), %s3015_s3, 1024, %s2469_s27, [#allocation6], %s2350_s15, %s2350_s15, %s2351_s16  }
  0x2e   : > { %s2185_s14 = scalar_lea.hbm %s3017_s5, 1024 }
  0x2f   : > { %p2186_p1 = scmp.ne.s32.totalorder %s3017_s5, %s2185_s14  ;;  %p2192_p10 = scmp.lt.u32.totalorder %s2185_s14, %s3017_s5 }
  0x31   : > { %p2188_p2 = pnand %p2186_p1, %p2492_p13 }
  0x33   : > { %p2189_p6 = pneg %p2188_p2 }
  0x35   : > { %p2194_p3 = pnand %p2192_p10, %p2189_p6 }
  0x37   : > { %2197 = shalt.err (!%p2194_p3)
}
  0x38   : > { %s2198_s27 = scalar_lea.vmem %s2480_s30, 1024  ;;  %p2206_p12 = scmp.lt.s32.totalorder %s2480_s30, %s2480_s30 }
  0x39   : > { %p2199_p5 = scmp.ne.s32.totalorder %s2480_s30, %s2198_s27  ;;  %p2207_p0 = scmp.lt.s32.totalorder %s2198_s27, %s2198_s27 }
  0x3b   : > { %p2201_p7 = pnand %p2199_p5, %p2492_p13  ;;  %p2208_p1 = por %p2207_p0, %p2206_p12 }
  0x3d   : > { %p2202_p9 = pneg %p2201_p7 }
  0x3f   : > { %p2209_p2 = pnand %p2208_p1, %p2202_p9 }
  0x41   : > { %2212 = shalt.err (!%p2209_p2)
}
  0x42   : > { %2039 = dma.hbm_to_vmem [thread:$0]  (!%p2476_p11), %s3017_s5, 1024, %s2480_s30, [#allocation6], %s2350_s15, %s2350_s15, %s2351_s16  }
  0x43   : > { %s2213_s22 = scalar_lea.hbm %s3021_s9, 1024 }
  0x44   : > { %p2214_p6 = scmp.ne.s32.totalorder %s3021_s9, %s2213_s22  ;;  %p2220_p5 = scmp.lt.u32.totalorder %s2213_s22, %s3021_s9 }
  0x46   : > { %p2216_p10 = pnand %p2214_p6, %p2492_p13 }
  0x48   : > { %p2217_p3 = pneg %p2216_p10 }
  0x4a   : > { %p2222_p7 = pnand %p2220_p5, %p2217_p3 }
  0x4c   : > { %2225 = shalt.err (!%p2222_p7)
}
  0x4d   : > { %s2226_s27 = scalar_lea.vmem %s353_s13, 1024  ;;  %p2234_p1 = scmp.lt.s32.totalorder %s353_s13, %s353_s13 }
  0x4e   : > { %p2227_p9 = scmp.ne.s32.totalorder %s353_s13, %s2226_s27  ;;  %p2235_p2 = scmp.lt.s32.totalorder %s2226_s27, %s2226_s27 }
  0x50   : > { %p2229_p12 = pnand %p2227_p9, %p2492_p13  ;;  %p2236_p4 = por %p2235_p2, %p2234_p1 }
  0x52   : > { %p2230_p0 = pneg %p2229_p12 }
  0x54   : > { %p2237_p8 = pnand %p2236_p4, %p2230_p0 }
  0x56   : > { %2240 = shalt.err (!%p2237_p8)
}
  0x57   : > { %2042 = dma.hbm_to_vmem [thread:$0]  (!%p2476_p11), %s3021_s9, 1024, %s353_s13, [#allocation9], %s2350_s15, %s2350_s15, %s2351_s16  }
  0x58   : > { %s2565_s24 = sadd.s32 1, %s2345_s20   ;;  %s36_s10 = sadd.s32 1, %s2341_s19 }
  0x59   : > { %s33_s28 = ssub.s32 %s2345_s20, %s2565_s24  ;;  %p43_p8 = scmp.ne.s32.totalorder %s2341_s19, %s2337_s18 }
  0x5a   : > { %p34_p4 = scmp.eq.s32.totalorder %s33_s28, 0  ;;  %p44_p13 = scmp.eq.s32.totalorder %s2345_s20, 0 }
  0x5b   : > { %p2054_p6 = scmp.lt.s32.totalorder %s2345_s20, 2  ;;  %p3040_p3 = scmp.eq.s32.totalorder %s2446_s21, 1 }
  0x5c   : > { %s2575_s11 = scalar_select %p34_p4, %s2341_s19, %s36_s10  }
  0x5d   : > { %p45_p10 = por %p44_p13, %p43_p8  ;;  %p2579_p5 = por %p3040_p3, %p43_p8 }
  0x5e   : > { %s369_s22 = sand.u32 1, %s2341_s19   ;;  %s1751_s26 = sshll.u32 %s2345_s20, 7 }
  0x5f   : > { %s1687_s13 = sshll.u32 %s369_s22, 3  ;;  %s2588_s14 = scalar_lea.hbm %s3012_s0, %s1751_s26 }
  0x60   : > { %s373_s27 = scalar_lea.vmem [#allocation2], %s1687_s13  ;;  %p2590_p11 = pnand %p2054_p6, %p45_p10 }
  0x61   : > { %s380_s30 = sshll.u32 %s373_s27, 4  ;;  %s2596_s28 = scalar_lea.sflag [#allocation3], %s369_s22  ;;  %s2594_s30 = int_to_ptr.vmem [resolvable:$true] %s380_s30 }
  0x62   : > { %s2241_s10 = scalar_lea.hbm %s2588_s14, 128  ;;  %p2243_p9 = pneg %p2590_p11 }
  0x63   : > { %p2242_p7 = scmp.ne.s32.totalorder %s2588_s14, %s2241_s10  ;;  %s2246_s29 = scalar_lea.hbm %s3012_s0, 256 }
  0x64   : > { %p2247_p1 = scmp.lt.u32.totalorder %s2588_s14, %s3012_s0  ;;  %p2248_p2 = scmp.lt.u32.totalorder %s2246_s29, %s2241_s10 }
  0x65   : > { %p2244_p12 = pnand %p2243_p9, %p2242_p7  ;;  %p2250_p8 = scmp.lt.u32.totalorder %s2241_s10, %s2588_s14 }
  0x66   : > { %p2249_p4 = por %p2248_p2, %p2247_p1 }
  0x67   : > { %p2245_p0 = pneg %p2244_p12 }
  0x68   : > { %p2251_p13 = por %p2250_p8, %p2249_p4 }
  0x6a   : > { %p2252_p6 = pnand %p2251_p13, %p2245_p0 }
  0x6c   : > { %2255 = shalt.err (!%p2252_p6)
}
  0x6d   : > { %s2256_s22 = scalar_lea.vmem %s2594_s30, 128  ;;  %s2352_s26 = smov [#allocation2]  }
  0x6e   : > { %p2257_p10 = scmp.ne.s32.totalorder %s2594_s30, %s2256_s22  ;;  %s2261_s13 = sshll.u32 %s2352_s26, 4  ;;  %s2262_s13 = int_to_ptr.vmem [resolvable:$false] %s2261_s13 }
  0x6f   : > { %s2263_s12 = scalar_lea.vmem %s2262_s13, 256  ;;  %p2264_p12 = scmp.lt.s32.totalorder %s2594_s30, %s2262_s13 }
  0x70   : > { %p2259_p3 = pnand %p2257_p10, %p2243_p9  ;;  %p2265_p1 = scmp.lt.s32.totalorder %s2263_s12, %s2256_s22 }
  0x72   : > { %p2260_p7 = pneg %p2259_p3  ;;  %p2266_p2 = por %p2265_p1, %p2264_p12 }
  0x74   : > { %p2267_p4 = pnand %p2266_p2, %p2260_p7 }
  0x76   : > { %2270 = shalt.err (!%p2267_p4)
}
  0x77   : > { %2046 = dma.hbm_to_vmem [thread:$0]  (!%p2590_p11), %s2588_s14, 128, %s2594_s30, %s2596_s28, %s2350_s15, %s2350_s15, %s2351_s16  }
  0x78   : > { %p3043_p9 = scmp.ne.s32.totalorder %s3037_s25, 0 }
  0x79   : > { %s2630_s10 = sand.u32 (!%p3043_p9), 1, %s2337_s18   ;;  %p3044_p0 = scmp.ne.s32.totalorder (!%p3043_p9), %s3034_s23, 0 }
  0x7a   : > { %392 = sbr.rel (%p3043_p9) target bundleno = 1990 (0x7c6), region = 64  ;;  %s1691_s29 = sshll.u32 (!%p3043_p9), %s2630_s10, 3 }
  0x7b   : > { %s395_s27 = scalar_lea.sflag (!%p3043_p9), [#allocation3], %s2630_s10  ;;  %s2634_s22 = scalar_lea.vmem (!%p3043_p9), [#allocation2], %s1691_s29 }
  0x81   : > { %2316 = dma.done.wait (%p3044_p0), %s395_s27, 128  }
  0x82   : > { %2318 = vsyncadd (%p3044_p0), %s395_s27, 4294967168  ;;  %p3045_p11 = scmp.eq.s32.totalorder %s2446_s21, 0 }
  0x84   : > { %2320 = dma.done.wait (%p3045_p11), [#allocation6], 2048   ;;  %p3046_p8 = pmov %p3045_p11 }
  0x86   : > { %2322 = vsyncadd (%p3046_p8), [#allocation6], 4294965248  ;;  %p3047_p13 = pmov %p3046_p8 }
  0x87   : > { %p3048_p6 = pmov %p3046_p8 }
  0x88   : > { %2324 = dma.done.wait (%p3047_p13), [#allocation9], 1024  }
  0x89   : > { %2326 = vsyncadd (%p3048_p6), [#allocation9], 4294966272  ;;  %v2353_v0 = vmov 0.0   ;;  %vm2354_vm0 = vmmov 0   ;;  %v2107_v1 = vld [vmem:[#allocation5] sm:$0xff]   ;;  %v2108_v2 = vld [vmem:[#allocation5 + $0x8] sm:$0xff]  }
  0x8a   : > { %1853 = vmatprep.subr.bf16.mxu1 %v2353_v0  ;;  %1869 = vmatprep.mubr.msk.bf16.mxu1 %vm2354_vm0, %v2353_v0  ;;  %v2109_v3 = vld [vmem:[#allocation5 + $0x10] sm:$0xff]   ;;  %v2110_v5 = vld [vmem:[#allocation5 + $0x18] sm:$0xff]   ;;  %v2111_v7 = vld [vmem:[#allocation5 + $0x20] sm:$0xff]   ;;  %s2355_s8 = smov 96   ;;  %s2356_s28 = smov 32   ;;  %vm824_vm1 = vcmask 261120  }
  0x8b   : > { %1833 = vmatprep.subr.bf16.mxu0 %v2353_v0  ;;  %1849 = vmatprep.mubr.msk.bf16.mxu0 %vm2354_vm0, %v2353_v0  ;;  %v2116_v4 = vld [vmem:[%s3013_s1] sm:$0xff]   ;;  %v2117_v6 = vld [vmem:[%s3013_s1 + $0x8] sm:$0xff]   ;;  %v2118_v8 = vld [vmem:[%s3013_s1 + $0x10] sm:$0xff]   ;;  %s2357_s12 = smov 64   ;;  %vm828_vm2 = vcmask 523264   ;;  %vm831_vm3 = vcmask 785408  }
  0x8c   : > { %1854 = vmatpush3.bf16.msra.mxu1 %v2107_v1  ;;  %1834 = vmatpush3.bf16.msra.mxu0 %v2116_v4  ;;  %v2112_v9 = vld [vmem:[#allocation5 + $0x28] sm:$0xff]   ;;  %v2113_v11 = vld [vmem:[#allocation5 + $0x30] sm:$0xff]   ;;  %v2114_v13 = vld [vmem:[#allocation5 + $0x38] sm:$0xff]   ;;  %s2358_s23 = smov 16   ;;  %s2359_s25 = smov 48   ;;  %vm1087_vm4 = vcmask 130048  }
  0x8d   : > { %1855 = vmatprep.subr.bf16.mxu1 %v2353_v0  ;;  %1835 = vmatprep.subr.bf16.mxu0 %v2353_v0  ;;  %v2119_v10 = vld [vmem:[%s3013_s1 + $0x18] sm:$0xff]   ;;  %v2120_v12 = vld [vmem:[%s3013_s1 + $0x20] sm:$0xff]   ;;  %v2121_v14 = vld [vmem:[%s3013_s1 + $0x28] sm:$0xff]   ;;  %vm1092_vm5 = vcmask 392192   ;;  %s2361_s15 = smov 80   ;;  %s3049_s30 = sld [smem:[#allocation17_spill]] }
  0x8e   : > { %v2115_v15 = vld [vmem:[%s2634_s22] sm:$0xff]   ;;  %v2122_v16 = vld [vmem:[%s3013_s1 + $0x30] sm:$0xff]   ;;  %v2123_v17 = vld [vmem:[%s3013_s1 + $0x38] sm:$0xff]   ;;  %s2360_s22 = smov 112   ;;  %s3050_s13 = sld [smem:[#allocation18_spill]] }
  0x8f   : > { %v2124_v18 = vld [vmem:[#allocation7] sm:$0xff]   ;;  %v2125_v19 = vld [vmem:[#allocation7 + $0x8] sm:$0xff]   ;;  %v2702_v20 = vld [vmem:[%s3019_s7] sm:$0xff]   ;;  %s1752_s27 = sshll.u32 %s2446_s21, 8  ;;  %s1566_s16 = scalar_lea.sflag [#allocation4], %s2630_s10 }
  0x90   : > { %1856 = vmatpush3.bf16.msra.mxu1 %v2108_v2  ;;  %1836 = vmatpush3.bf16.msra.mxu0 %v2117_v6  ;;  %v2709_v21 = vld [vmem:[%s3019_s7 + $0x8] sm:$0xff]   ;;  %v2126_v22 = vld [vmem:[#allocation7 + $0x10] sm:$0xff]   ;;  %v2717_v23 = vld [vmem:[%s3019_s7 + $0x10] sm:$0xff]   ;;  %s2362_s14 = smov [#allocation10]  }
  0x91   : > { %1857 = vmatprep.subr.bf16.mxu1 %v2353_v0  ;;  %1837 = vmatprep.subr.bf16.mxu0 %v2353_v0  ;;  %v2127_v24 = vld [vmem:[#allocation7 + $0x18] sm:$0xff]   ;;  %v2725_v25 = vld [vmem:[%s3019_s7 + $0x18] sm:$0xff]   ;;  %v2128_v26 = vld [vmem:[#allocation7 + $0x20] sm:$0xff]  }
  0x92   : > { %v2733_v27 = vld [vmem:[%s3019_s7 + $0x20] sm:$0xff]   ;;  %v2129_v28 = vld [vmem:[#allocation7 + $0x28] sm:$0xff]   ;;  %v2741_v29 = vld [vmem:[%s3019_s7 + $0x28] sm:$0xff]  }
  0x93   : > { %v2130_v30 = vld [vmem:[#allocation7 + $0x30] sm:$0xff]   ;;  %v2131_v31 = vld [vmem:[#allocation7 + $0x38] sm:$0xff]   ;;  %v2766_v32 = vld [vmem:[%s3019_s7 + $0x30] sm:$0xff]  }
  0x94   : > { %1858 = vmatpush3.bf16.msra.mxu1 %v2109_v3  ;;  %1838 = vmatpush3.bf16.msra.mxu0 %v2118_v8  ;;  %v2775_v33 = vld [vmem:[%s3019_s7 + $0x38] sm:$0xff]   ;;  %v1706_v34 = vld [vmem:[%s3016_s4] ss:$0 sm:$0xff] }
  0x95   : > { %1859 = vmatprep.subr.bf16.mxu1 %v2353_v0  ;;  %1839 = vmatprep.subr.bf16.mxu0 %v2353_v0  ;;  %v1696_v42 = vld [vmem:[%s3014_s2] ss:$0 sm:$0xff] }
  0x96   : > { %v1715_v56 = vld [vmem:[%s3018_s6] ss:$0 sm:$0xff] }
  0x98   : > { %1860 = vmatpush3.bf16.msra.mxu1 %v2110_v5  ;;  %1840 = vmatpush3.bf16.msra.mxu0 %v2119_v10 }
  0x99   : > { %1861 = vmatprep.subr.bf16.mxu1 %v2353_v0  ;;  %1841 = vmatprep.subr.bf16.mxu0 %v2353_v0 }
  0x9c   : > { %1862 = vmatpush3.bf16.msra.mxu1 %v2111_v7  ;;  %1842 = vmatpush3.bf16.msra.mxu0 %v2120_v12 }
  0x9d   : > { %1863 = vmatprep.subr.bf16.mxu1 %v2353_v0  ;;  %1843 = vmatprep.subr.bf16.mxu0 %v2353_v0 }
  0xa0   : > { %1864 = vmatpush3.bf16.msra.mxu1 %v2112_v9  ;;  %1844 = vmatpush3.bf16.msra.mxu0 %v2121_v14 }
  0xa1   : > { %1865 = vmatprep.subr.bf16.mxu1 %v2353_v0  ;;  %1845 = vmatprep.subr.bf16.mxu0 %v2353_v0 }
  0xa4   : > { %1866 = vmatpush3.bf16.msra.mxu1 %v2113_v11  ;;  %1846 = vmatpush3.bf16.msra.mxu0 %v2122_v16 }
  0xa5   : > { %1867 = vmatprep.subr.bf16.mxu1 %v2353_v0  ;;  %1847 = vmatprep.subr.bf16.mxu0 %v2353_v0 }
  0xa8   : > { %1868 = vmatpush3.bf16.msra.mxu1 %v2114_v13  ;;  %1848 = vmatpush3.bf16.msra.mxu0 %v2123_v17 }
  0xa9   : > { %1893 = vmatprep.subr.bf16.mxu1 %v2353_v0  ;;  %1873 = vmatprep.subr.bf16.mxu0 %v2353_v0 }
  0xab   : > { %1870 = vmatmul.mubr.bf16.vlgmr.msra.gmra.mrb[0].mxu1 %v2115_v15  ;;  %1850 = vmatmul.mubr.bf16.vlgmr.msra.gmra.mrb[0].mxu0 %v2115_v15 }
  0xac   : > { %1909 = vmatprep.mubr.msk.bf16.mxu1 %vm2354_vm0, %v2353_v0  ;;  %1889 = vmatprep.mubr.msk.bf16.mxu0 %vm2354_vm0, %v2353_v0 }
  0xad   : > { %1874 = vmatpush3.bf16.msra.mxu0 %v2124_v18  ;;  %1894 = vmatpush3.bf16.msra.mxu1 %v2702_v20 }
  0xae   : > { %1875 = vmatprep.subr.bf16.mxu0 %v2353_v0  ;;  %1895 = vmatprep.subr.bf16.mxu1 %v2353_v0 }
  0xb1   : > { %1876 = vmatpush3.bf16.msra.mxu0 %v2125_v19  ;;  %1896 = vmatpush3.bf16.msra.mxu1 %v2709_v21 }
  0xb2   : > { %1877 = vmatprep.subr.bf16.mxu0 %v2353_v0  ;;  %1897 = vmatprep.subr.bf16.mxu1 %v2353_v0 }
  0xb5   : > { %1878 = vmatpush3.bf16.msra.mxu0 %v2126_v22  ;;  %1898 = vmatpush3.bf16.msra.mxu1 %v2717_v23 }
  0xb6   : > { %1879 = vmatprep.subr.bf16.mxu0 %v2353_v0  ;;  %1899 = vmatprep.subr.bf16.mxu1 %v2353_v0 }
  0xb9   : > { %1880 = vmatpush3.bf16.msra.mxu0 %v2127_v24  ;;  %1900 = vmatpush3.bf16.msra.mxu1 %v2725_v25 }
  0xba   : > { %1881 = vmatprep.subr.bf16.mxu0 %v2353_v0  ;;  %1901 = vmatprep.subr.bf16.mxu1 %v2353_v0 }
  0xbd   : > { %1882 = vmatpush3.bf16.msra.mxu0 %v2128_v26  ;;  %1902 = vmatpush3.bf16.msra.mxu1 %v2733_v27 }
  0xbe   : > { %1883 = vmatprep.subr.bf16.mxu0 %v2353_v0  ;;  %1903 = vmatprep.subr.bf16.mxu1 %v2353_v0 }
  0xc1   : > { %1884 = vmatpush3.bf16.msra.mxu0 %v2129_v28  ;;  %1904 = vmatpush3.bf16.msra.mxu1 %v2741_v29 }
  0xc2   : > { %1885 = vmatprep.subr.bf16.mxu0 %v2353_v0  ;;  %1905 = vmatprep.subr.bf16.mxu1 %v2353_v0 }
  0xc5   : > { %1886 = vmatpush3.bf16.msra.mxu0 %v2130_v30  ;;  %1906 = vmatpush3.bf16.msra.mxu1 %v2766_v32 }
  0xc6   : > { %1887 = vmatprep.subr.bf16.mxu0 %v2353_v0  ;;  %1907 = vmatprep.subr.bf16.mxu1 %v2353_v0 }
  0xc9   : > { %1888 = vmatpush3.bf16.msra.mxu0 %v2131_v31  ;;  %1908 = vmatpush3.bf16.msra.mxu1 %v2775_v33 }
  0xca   : > { %1913 = vmatprep.subr.bf16.mxu0 %v2353_v0  ;;  %1933 = vmatprep.subr.bf16.mxu1 %v2353_v0 }
  0xcc   : > { %1890 = vmatmul.mubr.bf16.vlgmr.msra.gmra.mrb[4].mxu0 %v2115_v15 }
  0xcd   : > { %1914 = vmatpush3.bf16.msra.mxu0 %v2702_v20  ;;  %1929 = vmatprep.mubr.msk.bf16.mxu0 %vm2354_vm0, %v2353_v0 }
  0xce   : > { %1915 = vmatprep.subr.bf16.mxu0 %v2353_v0 }
  0xd1   : > { %1916 = vmatpush3.bf16.msra.mxu0 %v2709_v21 }
  0xd2   : > { %1917 = vmatprep.subr.bf16.mxu0 %v2353_v0 }
  0xd5   : > { %1918 = vmatpush3.bf16.msra.mxu0 %v2717_v23 }
  0xd6   : > { %1919 = vmatprep.subr.bf16.mxu0 %v2353_v0 }
  0xd9   : > { %1920 = vmatpush3.bf16.msra.mxu0 %v2725_v25 }
  0xda   : > { %1921 = vmatprep.subr.bf16.mxu0 %v2353_v0 }
  0xdd   : > { %1922 = vmatpush3.bf16.msra.mxu0 %v2733_v27 }
  0xde   : > { %1923 = vmatprep.subr.bf16.mxu0 %v2353_v0 }
  0xe1   : > { %1924 = vmatpush3.bf16.msra.mxu0 %v2741_v29 }
  0xe2   : > { %1925 = vmatprep.subr.bf16.mxu0 %v2353_v0 }
  0xe5   : > { %1926 = vmatpush3.bf16.msra.mxu0 %v2766_v32 }
  0xe6   : > { %1927 = vmatprep.subr.bf16.mxu0 %v2353_v0 }
  0xe9   : > { %1928 = vmatpush3.bf16.msra.mxu0 %v2775_v33 }
  0xea   : > { %1953 = vmatprep.subr.bf16.mxu0 %v2353_v0 }
 0x17e   : > { %v695_v35 = vpop.f32.mrb[0].mxu1  ;;  %v583_v43 = vpop.f32.mrb[0].mxu0 }
 0x17f   : > { %v1871_v36 = vpop.f32.mrb[1].mxu1  ;;  %v696_v38 = vadd.f32 %v1706_v34, %v695_v35  ;;  %v584_v44 = vadd.f32 %v1696_v42, %v583_v43  ;;  %v1851_v45 = vpop.f32.mrb[1].mxu0 }
 0x180   : > { %v698_v37 = vpop.f32.mrb[2].mxu1  ;;  %v586_v46 = vpop.f32.mrb[2].mxu0 }
 0x181   : > { %v699_v39 = vadd.f32 %v1706_v34, %v698_v37  ;;  %v1872_v40 = vpop.f32.mrb[3].mxu1  ;;  %v587_v47 = vadd.f32 %v1696_v42, %v586_v46  ;;  %v1852_v48 = vpop.f32.mrb[3].mxu0 }
 0x183   : > { %v2784_v41 = vpack.c.bf16 %v699_v39, %v696_v38  ;;  %v2795_v49 = vpack.c.bf16 %v587_v47, %v584_v44 }
 0x185   : > { %822 = vrot.lane.b32.xlu1 %v2784_v41, %s2355_s8  ;;  %818 = vrot.lane.b32.xlu0 %v2784_v41, %s2356_s28 }
 0x189   : > { %820 = vrot.lane.b32.xlu0 %v2784_v41, %s2357_s12 }
 0x19f   : > { %v807_v61 = vpop.f32.mrb[4].mxu0 }
 0x1a0   : > { %v808_v63 = vadd.f32 %v1715_v56, %v807_v61  ;;  %v1891_v1 = vpop.f32.mrb[5].mxu0 }
 0x1a1   : > { %v810_v2 = vpop.f32.mrb[6].mxu0 }
 0x1a2   : > { %v811_v3 = vadd.f32 %v1715_v56, %v810_v2  ;;  %v1892_v4 = vpop.f32.mrb[7].mxu0 }
 0x1a4   : > { %v2816_v5 = vpack.c.bf16 %v811_v3, %v808_v63 }
 0x1f7   : > { %v823_v50 = vpop.permute.xlu1 %822  ;;  %v819_v51 = vpop.permute.xlu0 %818 }
 0x1f8   : > { %v925_v52 = vsel %vm824_vm1, %v823_v50, %v2784_v41  ;;  %v827_v53 = vsel %vm824_vm1, %v2784_v41, %v819_v51 }
 0x1f9   : > { %v926_v54 = vsel %vm828_vm2, %v925_v52, %v819_v51 }
 0x1fb   : > { %v821_v55 = vpop.permute.xlu0 %820 }
 0x1fc   : > { %v830_v57 = vsel %vm828_vm2, %v827_v53, %v821_v55  ;;  %v927_v58 = vsel %vm831_vm3, %v926_v54, %v821_v55  ;;  %v1017_v6 = vsel %vm824_vm1, %v819_v51, %v821_v55  ;;  %v971_v7 = vsel %vm824_vm1, %v821_v55, %v823_v50 }
 0x1fd   : > { %v833_v59 = vsel %vm831_vm3, %v830_v57, %v823_v50  ;;  %v929_v60 = vmul.bf16 %v927_v58, %v2795_v49  ;;  %v1018_v8 = vsel %vm828_vm2, %v1017_v6, %v823_v50  ;;  %v972_v9 = vsel %vm828_vm2, %v971_v7, %v2784_v41 }
 0x1fe   : > { %v835_v62 = vmul.bf16 %v833_v59, %v2795_v49  ;;  %v1019_v10 = vsel %vm831_vm3, %v1018_v8, %v2784_v41  ;;  %v973_v11 = vsel %vm831_vm3, %v972_v9, %v819_v51 }
 0x1ff   : > { %1930 = vmatmul.mubr.bf16.vlgmr.msra.gmra.mrb[8].mxu0 %v929_v60  ;;  %v1021_v12 = vmul.bf16 %v1019_v10, %v2795_v49  ;;  %v975_v13 = vmul.bf16 %v973_v11, %v2795_v49 }
 0x200   : > { %1954 = vmatpush3.bf16.msra.mxu0 %v2702_v20  ;;  %1910 = vmatmul.mubr.bf16.vlgmr.msra.gmra.mrb[4].mxu1 %v835_v62 }
 0x201   : > { %1934 = vmatpush3.bf16.msra.mxu1 %v2702_v20  ;;  %1955 = vmatprep.subr.bf16.mxu0 %v2353_v0 }
 0x202   : > { %1935 = vmatprep.subr.bf16.mxu1 %v2353_v0  ;;  %1969 = vmatprep.mubr.msk.bf16.mxu0 %vm2354_vm0, %v2353_v0 }
 0x203   : > { %1949 = vmatprep.mubr.msk.bf16.mxu1 %vm2354_vm0, %v2353_v0 }
 0x204   : > { %1956 = vmatpush3.bf16.msra.mxu0 %v2709_v21 }
 0x205   : > { %1936 = vmatpush3.bf16.msra.mxu1 %v2709_v21  ;;  %1957 = vmatprep.subr.bf16.mxu0 %v2353_v0 }
 0x206   : > { %1937 = vmatprep.subr.bf16.mxu1 %v2353_v0 }
 0x208   : > { %1958 = vmatpush3.bf16.msra.mxu0 %v2717_v23 }
 0x209   : > { %1938 = vmatpush3.bf16.msra.mxu1 %v2717_v23  ;;  %1959 = vmatprep.subr.bf16.mxu0 %v2353_v0 }
 0x20a   : > { %1939 = vmatprep.subr.bf16.mxu1 %v2353_v0 }
 0x20c   : > { %1960 = vmatpush3.bf16.msra.mxu0 %v2725_v25 }
 0x20d   : > { %1940 = vmatpush3.bf16.msra.mxu1 %v2725_v25  ;;  %1961 = vmatprep.subr.bf16.mxu0 %v2353_v0 }
 0x20e   : > { %1941 = vmatprep.subr.bf16.mxu1 %v2353_v0 }
 0x210   : > { %1962 = vmatpush3.bf16.msra.mxu0 %v2733_v27 }
 0x211   : > { %1942 = vmatpush3.bf16.msra.mxu1 %v2733_v27  ;;  %1963 = vmatprep.subr.bf16.mxu0 %v2353_v0 }
 0x212   : > { %1943 = vmatprep.subr.bf16.mxu1 %v2353_v0 }
 0x214   : > { %1964 = vmatpush3.bf16.msra.mxu0 %v2741_v29 }
 0x215   : > { %1944 = vmatpush3.bf16.msra.mxu1 %v2741_v29  ;;  %1965 = vmatprep.subr.bf16.mxu0 %v2353_v0 }
 0x216   : > { %1945 = vmatprep.subr.bf16.mxu1 %v2353_v0 }
 0x218   : > { %1966 = vmatpush3.bf16.msra.mxu0 %v2766_v32 }
 0x219   : > { %1946 = vmatpush3.bf16.msra.mxu1 %v2766_v32  ;;  %1967 = vmatprep.subr.bf16.mxu0 %v2353_v0 }
 0x21a   : > { %1947 = vmatprep.subr.bf16.mxu1 %v2353_v0 }
 0x21c   : > { %1968 = vmatpush3.bf16.msra.mxu0 %v2775_v33 }
 0x21d   : > { %1948 = vmatpush3.bf16.msra.mxu1 %v2775_v33  ;;  %1997 = vmatprep.subr.bf16.mxu0 %v2353_v0 }
 0x21e   : > { %1973 = vmatprep.subr.bf16.mxu1 %v2353_v0 }
 0x21f   : > { %1970 = vmatmul.mubr.bf16.vlgmr.msra.gmra.mrb[12].mxu0 %v1021_v12 }
 0x220   : > { %1950 = vmatmul.mubr.bf16.vlgmr.msra.gmra.mrb[8].mxu1 %v975_v13  ;;  %2013 = vmatprep.mubr.msk.bf16.mxu0 %vm2354_vm0, %v2353_v0 }
 0x221   : > { %1975 = vmatprep.mubr.msk.bf16.mxu1 %vm2354_vm0, %v2353_v0 }
 0x2d2   : > { %v964_v14 = vpop.f32.mrb[8].mxu0 }
 0x2d3   : > { %v918_v15 = vpop.f32.mrb[4].mxu1  ;;  %1065 = vrot.lane.b32.xlu1 %v964_v14, %s2358_s23  ;;  %v1931_v16 = vpop.f32.mrb[9].mxu0 }
 0x2d4   : > { %v1911_v17 = vpop.f32.mrb[5].mxu1  ;;  %v967_v18 = vpop.f32.mrb[10].mxu0 }
 0x2d5   : > { %v921_v19 = vpop.f32.mrb[6].mxu1  ;;  %1067 = vrot.lane.b32.xlu0 %v967_v18, %s2358_s23  ;;  %v1932_v20 = vpop.f32.mrb[11].mxu0 }
 0x2d6   : > { %v1912_v21 = vpop.f32.mrb[7].mxu1 }
 0x2f2   : > { %v1056_v22 = vpop.f32.mrb[12].mxu0 }
 0x2f3   : > { %v1010_v23 = vpop.f32.mrb[8].mxu1  ;;  %v1971_v24 = vpop.f32.mrb[13].mxu0 }
 0x2f4   : > { %v1951_v25 = vpop.f32.mrb[9].mxu1  ;;  %1073 = vrot.lane.b32.xlu1 %v1010_v23, %s2356_s28  ;;  %v1059_v26 = vpop.f32.mrb[14].mxu0  ;;  %v2140_v24 = vld [vmem:[%s3049_s30] sm:$0xff]   ;;  %s2275_s30 = sshll.u32 %s2362_s14, 4  ;;  %s2276_s30 = int_to_ptr.vmem [resolvable:$false] %s2275_s30 }
 0x2f5   : > { %v1013_v27 = vpop.f32.mrb[10].mxu1  ;;  %v1972_v28 = vpop.f32.mrb[15].mxu0  ;;  %1974 = vmatpush3.bf16.msra.mxu1 %v2140_v24 }
 0x2f6   : > { %v1952_v29 = vpop.f32.mrb[11].mxu1  ;;  %1075 = vrot.lane.b32.xlu0 %v1013_v27, %s2356_s28  ;;  %1979 = vmatprep.subr.bf16.mxu1 %v2353_v0 }
 0x2f8   : > { %1081 = vrot.lane.b32.xlu1 %v1056_v22, %s2359_s25 }
 0x2fa   : > { %1083 = vrot.lane.b32.xlu0 %v1059_v26, %s2359_s25 }
 0x345   : > { %v1066_v30 = vpop.permute.xlu1 %1065 }
 0x346   : > { %v1088_v34 = vsel %vm1087_vm4, %v918_v15, %v1066_v30 }
 0x347   : > { %v1068_v31 = vpop.permute.xlu0 %1067 }
 0x348   : > { %v1089_v37 = vsel %vm1087_vm4, %v921_v19, %v1068_v31 }
 0x366   : > { %v1074_v32 = vpop.permute.xlu1 %1073 }
 0x367   : > { %v1090_v35 = vsel %vm824_vm1, %v1088_v34, %v1074_v32 }
 0x368   : > { %v1076_v33 = vpop.permute.xlu0 %1075 }
 0x369   : > { %v1091_v39 = vsel %vm824_vm1, %v1089_v37, %v1076_v33 }
 0x36a   : > { %v1082_v36 = vpop.permute.xlu1 %1081 }
 0x36b   : > { %v1093_v38 = vsel %vm1092_vm5, %v1090_v35, %v1082_v36 }
 0x36c   : > { %v1095_v40 = vmul.f32 0.35355338, %v1093_v38  ;;  %v1084_v41 = vpop.permute.xlu0 %1083 }
 0x36d   : > { %v1094_v42 = vsel %vm1092_vm5, %v1091_v39, %v1084_v41 }
 0x36e   : > { %v1096_v43 = vmul.f32 0.35355338, %v1094_v42  ;;  %1099 = vrot.lane.b32.xlu1 %v1095_v40, %s2360_s22  ;;  %v2141_v42 = vld [vmem:[#allocation8] sm:$0xff]  }
 0x36f   : > { %1998 = vmatpush3.bf16.msra.mxu0 %v2141_v42 }
 0x370   : > { %1101 = vrot.lane.b32.xlu0 %v1096_v43, %s2360_s22  ;;  %1999 = vmatprep.subr.bf16.mxu0 %v2353_v0 }
 0x372   : > { %1107 = vrot.lane.b32.xlu1 %v1095_v40, %s2355_s8 }
 0x374   : > { %1109 = vrot.lane.b32.xlu0 %v1096_v43, %s2355_s8 }
 0x376   : > { %1115 = vrot.lane.b32.xlu1 %v1095_v40, %s2361_s15 }
 0x378   : > { %1117 = vrot.lane.b32.xlu0 %v1096_v43, %s2361_s15 }
 0x3e0   : > { %v1100_v44 = vpop.permute.xlu1 %1099 }
 0x3e1   : > { %v1105_v47 = vmax.f32 %v1095_v40, %v1100_v44 }
 0x3e2   : > { %v1102_v45 = vpop.permute.xlu0 %1101 }
 0x3e3   : > { %v1106_v49 = vmax.f32 %v1096_v43, %v1102_v45 }
 0x3e4   : > { %v1108_v46 = vpop.permute.xlu1 %1107 }
 0x3e5   : > { %v1113_v50 = vmax.f32 %v1105_v47, %v1108_v46  ;;  %v2143_v47 = vld [vmem:[#allocation8 + $0x10] sm:$0xff]  }
 0x3e6   : > { %v1110_v48 = vpop.permute.xlu0 %1109 }
 0x3e7   : > { %v1114_v52 = vmax.f32 %v1106_v49, %v1110_v48  ;;  %v2144_v48 = vld [vmem:[#allocation8 + $0x18] sm:$0xff]   ;;  %v2145_v49 = vld [vmem:[#allocation8 + $0x20] sm:$0xff]  }
 0x3e8   : > { %v1116_v51 = vpop.permute.xlu1 %1115 }
 0x3e9   : > { %v1121_v53 = vmax.f32 %v1113_v50, %v1116_v51  ;;  %v2146_v50 = vld [vmem:[#allocation8 + $0x28] sm:$0xff]  }
 0x3ea   : > { %v1118_v54 = vpop.permute.xlu0 %1117 }
 0x3eb   : > { %v1122_v55 = vmax.f32 %v1114_v52, %v1118_v54  ;;  %1125 = vrot.lane.b32.xlu1 %v1121_v53, %s2358_s23 }
 0x3ed   : > { %1127 = vrot.lane.b32.xlu0 %v1122_v55, %s2358_s23 }
 0x3ef   : > { %1131 = vrot.lane.b32.xlu1 %v1121_v53, %s2356_s28 }
 0x3f1   : > { %1133 = vrot.lane.b32.xlu0 %v1122_v55, %s2356_s28 }
 0x3f3   : > { %1137 = vrot.lane.b32.xlu1 %v1121_v53, %s2359_s25 }
 0x3f5   : > { %1139 = vrot.lane.b32.xlu0 %v1122_v55, %s2359_s25 }
 0x45d   : > { %v1126_v56 = vpop.permute.xlu1 %1125 }
 0x45e   : > { %v1143_v60 = vsel %vm1087_vm4, %v1121_v53, %v1126_v56  ;;  %v2148_v56 = vld [vmem:[#allocation8 + $0x38] sm:$0xff]  }
 0x45f   : > { %v1128_v57 = vpop.permute.xlu0 %1127 }
 0x460   : > { %v1144_v63 = vsel %vm1087_vm4, %v1122_v55, %v1128_v57  ;;  %v2147_v55 = vld [vmem:[#allocation8 + $0x30] sm:$0xff]  }
 0x461   : > { %v1132_v58 = vpop.permute.xlu1 %1131 }
 0x462   : > { %v1145_v61 = vsel %vm824_vm1, %v1143_v60, %v1132_v58 }
 0x463   : > { %v1134_v59 = vpop.permute.xlu0 %1133 }
 0x464   : > { %v1146_v2 = vsel %vm824_vm1, %v1144_v63, %v1134_v59 }
 0x465   : > { %v1138_v62 = vpop.permute.xlu1 %1137 }
 0x466   : > { %v1147_v1 = vsel %vm1092_vm5, %v1145_v61, %v1138_v62 }
 0x467   : > { %v1149_v3 = vsub.f32 %v1095_v40, %v1147_v1  ;;  %v1140_v4 = vpop.permute.xlu0 %1139 }
 0x468   : > { %v1148_v6 = vsel %vm1092_vm5, %v1146_v2, %v1140_v4 }
 0x469   : > { %v1151_v7 = vmul.f32 1.442695, %v1149_v3  ;;  %v1150_v8 = vsub.f32 %v1096_v43, %v1148_v6  ;;  %v2142_v43 = vld [vmem:[#allocation8 + $0x8] sm:$0xff]  }
 0x46a   : > { %2000 = vmatpush3.bf16.msra.mxu0 %v2142_v43 }
 0x46b   : > { %2149 = vpow2.f32 %v1151_v7  ;;  %v1153_v9 = vmul.f32 1.442695, %v1150_v8  ;;  %2001 = vmatprep.subr.bf16.mxu0 %v2353_v0 }
 0x46d   : > { %2151 = vpow2.f32 %v1153_v9 }
 0x46e   : > { %2002 = vmatpush3.bf16.msra.mxu0 %v2143_v47 }
 0x46f   : > { %2003 = vmatprep.subr.bf16.mxu0 %v2353_v0 }
 0x472   : > { %2004 = vmatpush3.bf16.msra.mxu0 %v2144_v48 }
 0x473   : > { %2005 = vmatprep.subr.bf16.mxu0 %v2353_v0 }
 0x475   : > { %v2150_v10 = vpop.eup %2149 }
 0x476   : > { %1157 = vrot.lane.b32.xlu1 %v2150_v10, %s2360_s22  ;;  %2006 = vmatpush3.bf16.msra.mxu0 %v2145_v49 }
 0x477   : > { %v2152_v11 = vpop.eup %2151  ;;  %2007 = vmatprep.subr.bf16.mxu0 %v2353_v0 }
 0x478   : > { %1159 = vrot.lane.b32.xlu0 %v2152_v11, %s2360_s22 }
 0x47a   : > { %1165 = vrot.lane.b32.xlu1 %v2150_v10, %s2355_s8  ;;  %2008 = vmatpush3.bf16.msra.mxu0 %v2146_v50 }
 0x47b   : > { %2009 = vmatprep.subr.bf16.mxu0 %v2353_v0 }
 0x47c   : > { %1167 = vrot.lane.b32.xlu0 %v2152_v11, %s2355_s8 }
 0x47e   : > { %1173 = vrot.lane.b32.xlu1 %v2150_v10, %s2361_s15  ;;  %2010 = vmatpush3.bf16.msra.mxu0 %v2147_v55 }
 0x47f   : > { %2011 = vmatprep.subr.bf16.mxu0 %v2353_v0 }
 0x480   : > { %1175 = vrot.lane.b32.xlu0 %v2152_v11, %s2361_s15 }
 0x482   : > { %2012 = vmatpush3.bf16.msra.mxu0 %v2148_v56 }
 0x4e8   : > { %v1158_v12 = vpop.permute.xlu1 %1157 }
 0x4e9   : > { %v1163_v15 = vadd.f32 %v2150_v10, %v1158_v12 }
 0x4ea   : > { %v1160_v13 = vpop.permute.xlu0 %1159 }
 0x4eb   : > { %v1164_v17 = vadd.f32 %v2152_v11, %v1160_v13 }
 0x4ec   : > { %v1166_v14 = vpop.permute.xlu1 %1165 }
 0x4ed   : > { %v1171_v18 = vadd.f32 %v1166_v14, %v1163_v15 }
 0x4ee   : > { %v1168_v16 = vpop.permute.xlu0 %1167 }
 0x4ef   : > { %v1172_v20 = vadd.f32 %v1168_v16, %v1164_v17 }
 0x4f0   : > { %v1174_v19 = vpop.permute.xlu1 %1173 }
 0x4f1   : > { %v1179_v21 = vadd.f32 %v1174_v19, %v1171_v18 }
 0x4f2   : > { %v1176_v22 = vpop.permute.xlu0 %1175 }
 0x4f3   : > { %2153 = vrcp.f32 %v1179_v21  ;;  %v1180_v23 = vadd.f32 %v1176_v22, %v1172_v20 }
 0x4f5   : > { %2155 = vrcp.f32 %v1180_v23 }
 0x4fd   : > { %v2154_v25 = vpop.eup %2153 }
 0x4fe   : > { %1185 = vrot.lane.b32.xlu1 %v2154_v25, %s2358_s23 }
 0x4ff   : > { %v2156_v26 = vpop.eup %2155 }
 0x500   : > { %1187 = vrot.lane.b32.xlu0 %v2156_v26, %s2358_s23 }
 0x502   : > { %1191 = vrot.lane.b32.xlu1 %v2154_v25, %s2356_s28 }
 0x504   : > { %1193 = vrot.lane.b32.xlu0 %v2156_v26, %s2356_s28 }
 0x506   : > { %1197 = vrot.lane.b32.xlu1 %v2154_v25, %s2359_s25 }
 0x508   : > { %1199 = vrot.lane.b32.xlu0 %v2156_v26, %s2359_s25 }
 0x570   : > { %v1186_v27 = vpop.permute.xlu1 %1185 }
 0x571   : > { %v1203_v31 = vsel %vm1087_vm4, %v2154_v25, %v1186_v27 }
 0x572   : > { %v1188_v28 = vpop.permute.xlu0 %1187 }
 0x573   : > { %v1204_v34 = vsel %vm1087_vm4, %v2156_v26, %v1188_v28 }
 0x574   : > { %v1192_v29 = vpop.permute.xlu1 %1191 }
 0x575   : > { %v1205_v32 = vsel %vm824_vm1, %v1203_v31, %v1192_v29 }
 0x576   : > { %v1194_v30 = vpop.permute.xlu0 %1193 }
 0x577   : > { %v1206_v36 = vsel %vm824_vm1, %v1204_v34, %v1194_v30 }
 0x578   : > { %v1198_v33 = vpop.permute.xlu1 %1197 }
 0x579   : > { %v1207_v35 = vsel %vm1092_vm5, %v1205_v32, %v1198_v33 }
 0x57a   : > { %v1200_v37 = vpop.permute.xlu0 %1199  ;;  %v1209_v39 = vmul.f32 %v2150_v10, %v1207_v35 }
 0x57b   : > { %v1208_v38 = vsel %vm1092_vm5, %v1206_v36, %v1200_v37 }
 0x57c   : > { %v1210_v40 = vmul.f32 %v2152_v11, %v1208_v38 }
 0x57e   : > { %v1211_v41 = vpack.c.bf16 %v1210_v40, %v1209_v39 }
 0x580   : > { %1338 = vrot.lane.b32.xlu0 %v1211_v41, %s2355_s8  ;;  %1282 = vrot.lane.b32.xlu1 %v1211_v41, %s2360_s22  ;;  %s3051_s22 = sld [smem:[#allocation19_spill]] }
 0x581   : > { %1976 = vmatmul.mubr.msk.bf16.vlgmr.msra.gmra.mrb[12].mxu1 %vm1087_vm4, %v1211_v41 }
 0x582   : > { %1980 = vmatpush3.bf16.msra.mxu1 %v2140_v24  ;;  %1981 = vmatprep.mubr.msk.bf16.mxu1 %vm2354_vm0, %v2353_v0 }
 0x583   : > { %1985 = vmatprep.subr.bf16.mxu1 %v2353_v0 }
 0x584   : > { %1263 = vrot.lane.b32.xlu0 %v2816_v5, %s2356_s28  ;;  %1394 = vrot.lane.b32.xlu1 %v1211_v41, %s2361_s15 }
 0x586   : > { %s2968_s15 = scalar_lea.hbm %s3051_s22, %s1752_s27 }
 0x588   : > { %1265 = vrot.lane.b32.xlu0 %v2816_v5, %s2357_s12  ;;  %1267 = vrot.lane.b32.xlu1 %v2816_v5, %s2355_s8  ;;  %s1695_s8 = sshll.u32 %s2630_s10, 4 }
 0x589   : > { %s448_s12 = scalar_lea.vmem [#allocation10], %s1695_s8  ;;  %s2277_s8 = scalar_lea.vmem %s2276_s30, 512 }
 0x58a   : > { %s1579_s29 = sshll.u32 %s448_s12, 4  ;;  %s2963_s29 = int_to_ptr.vmem [resolvable:$true] %s1579_s29 }
 0x58b   : > { %s2271_s21 = scalar_lea.vmem %s2963_s29, 256  ;;  %p2278_p12 = scmp.lt.s32.totalorder %s2963_s29, %s2276_s30 }
 0x58c   : > { %p2272_p10 = scmp.ne.s32.totalorder %s2963_s29, %s2271_s21  ;;  %p2279_p1 = scmp.lt.s32.totalorder %s2277_s8, %s2271_s21 }
 0x58e   : > { %p2273_p3 = pnand %p2272_p10, %p2579_p5  ;;  %p2280_p2 = por %p2279_p1, %p2278_p12 }
 0x590   : > { %p2274_p7 = pneg %p2273_p3 }
 0x592   : > { %p2281_p4 = pnand %p2280_p2, %p2274_p7 }
 0x5f2   : > { %v1283_v44 = vpop.permute.xlu1 %1282  ;;  %v1339_v45 = vpop.permute.xlu0 %1338 }
 0x5f3   : > { %1982 = vmatmul.mubr.msk.bf16.vlgmr.msra.gmra.mrb[16].mxu1 %vm1087_vm4, %v1283_v44 }
 0x5f4   : > { %1986 = vmatpush3.bf16.msra.mxu1 %v2140_v24  ;;  %1987 = vmatprep.mubr.msk.bf16.mxu1 %vm2354_vm0, %v2353_v0 }
 0x5f5   : > { %1991 = vmatprep.subr.bf16.mxu1 %v2353_v0 }
 0x5f6   : > { %v1395_v46 = vpop.permute.xlu1 %1394  ;;  %v1264_v57 = vpop.permute.xlu0 %1263 }
 0x5f7   : > { %v1271_v61 = vsel %vm824_vm1, %v2816_v5, %v1264_v57 }
 0x5fa   : > { %v1268_v58 = vpop.permute.xlu1 %1267  ;;  %v1266_v59 = vpop.permute.xlu0 %1265 }
 0x5fb   : > { %1988 = vmatmul.mubr.msk.bf16.vlgmr.msra.gmra.mrb[20].mxu1 %vm1087_vm4, %v1339_v45  ;;  %v1328_v60 = vsel %vm824_vm1, %v1268_v58, %v2816_v5  ;;  %v1273_v62 = vsel %vm828_vm2, %v1271_v61, %v1266_v59  ;;  %v1440_v20 = vsel %vm824_vm1, %v1264_v57, %v1266_v59 }
 0x5fc   : > { %1992 = vmatpush3.bf16.msra.mxu1 %v2140_v24  ;;  %1993 = vmatprep.mubr.msk.bf16.mxu1 %vm2354_vm0, %v2353_v0  ;;  %v1329_v63 = vsel %vm828_vm2, %v1328_v60, %v1264_v57  ;;  %v1275_v1 = vsel %vm831_vm3, %v1273_v62, %v1268_v58  ;;  %v1384_v0 = vsel %vm824_vm1, %v1266_v59, %v1268_v58 }
 0x5fd   : > { %v1330_v2 = vsel %vm831_vm3, %v1329_v63, %v1266_v59  ;;  %v1277_v3 = vunpack.c.l.bf16 %v1275_v1  ;;  %v1278_v6 = vunpack.c.h.bf16 %v1275_v1  ;;  %v1385_v12 = vsel %vm828_vm2, %v1384_v0, %v2816_v5 }
 0x5fe   : > { %v1332_v4 = vunpack.c.l.bf16 %v1330_v2  ;;  %v1333_v11 = vunpack.c.h.bf16 %v1330_v2  ;;  %v1386_v18 = vsel %vm831_vm3, %v1385_v12, %v1264_v57  ;;  %v1441_v23 = vsel %vm828_vm2, %v1440_v20, %v1268_v58 }
 0x5ff   : > { %v1388_v21 = vunpack.c.l.bf16 %v1386_v18  ;;  %v1389_v26 = vunpack.c.h.bf16 %v1386_v18  ;;  %v1442_v31 = vsel %vm831_vm3, %v1441_v23, %v2816_v5  ;;  %v1737_v5 = vld [vmem:[%s3050_s13] ss:$0 sm:$0xff] }
 0x600   : > { %v1444_v33 = vunpack.c.l.bf16 %v1442_v31  ;;  %v1445_v37 = vunpack.c.h.bf16 %v1442_v31 }
 0x603   : > { %1994 = vmatmul.mubr.msk.bf16.vlgmr.msra.gmra.mrb[24].mxu1 %vm1087_vm4, %v1395_v46 }
 0x654   : > { %v1255_v51 = vpop.f32.mrb[12].mxu1 }
 0x655   : > { %v1977_v52 = vpop.f32.mrb[13].mxu1  ;;  %v1279_v8 = vmul.f32 %v1277_v3, %v1255_v51 }
 0x656   : > { %v1258_v53 = vpop.f32.mrb[14].mxu1 }
 0x657   : > { %v1978_v54 = vpop.f32.mrb[15].mxu1  ;;  %v1280_v14 = vmul.f32 %v1278_v6, %v1258_v53 }
 0x6c6   : > { %v1321_v7 = vpop.f32.mrb[16].mxu1 }
 0x6c7   : > { %v1334_v9 = vmul.f32 %v1332_v4, %v1321_v7  ;;  %v1983_v10 = vpop.f32.mrb[17].mxu1 }
 0x6c8   : > { %v1324_v13 = vpop.f32.mrb[18].mxu1 }
 0x6c9   : > { %v1336_v15 = vadd.f32 %v1334_v9, %v1279_v8  ;;  %v1335_v16 = vmul.f32 %v1333_v11, %v1324_v13  ;;  %v1984_v17 = vpop.f32.mrb[19].mxu1 }
 0x6cb   : > { %v1337_v19 = vadd.f32 %v1335_v16, %v1280_v14 }
 0x6ce   : > { %v1377_v22 = vpop.f32.mrb[20].mxu1 }
 0x6cf   : > { %v1390_v24 = vmul.f32 %v1388_v21, %v1377_v22  ;;  %v1989_v25 = vpop.f32.mrb[21].mxu1 }
 0x6d0   : > { %v1380_v27 = vpop.f32.mrb[22].mxu1 }
 0x6d1   : > { %v1392_v28 = vadd.f32 %v1390_v24, %v1336_v15  ;;  %v1391_v29 = vmul.f32 %v1389_v26, %v1380_v27  ;;  %v1990_v30 = vpop.f32.mrb[23].mxu1 }
 0x6d3   : > { %v1393_v32 = vadd.f32 %v1391_v29, %v1337_v19 }
 0x6d6   : > { %v1433_v34 = vpop.f32.mrb[24].mxu1 }
 0x6d7   : > { %v1446_v35 = vmul.f32 %v1444_v33, %v1433_v34  ;;  %v1995_v36 = vpop.f32.mrb[25].mxu1 }
 0x6d8   : > { %v1436_v38 = vpop.f32.mrb[26].mxu1 }
 0x6d9   : > { %v1448_v39 = vadd.f32 %v1446_v35, %v1392_v28  ;;  %v1447_v40 = vmul.f32 %v1445_v37, %v1436_v38  ;;  %v1996_v41 = vpop.f32.mrb[27].mxu1 }
 0x6db   : > { %v1449_v42 = vadd.f32 %v1447_v40, %v1393_v32 }
 0x6dd   : > { %v1450_v43 = vpack.c.bf16 %v1449_v42, %v1448_v39 }
 0x6df   : > { %2014 = vmatmul.mubr.bf16.vlgmr.msra.gmra.mrb[16].mxu0 %v1450_v43 }
 0x7b2   : > { %v1556_v44 = vpop.f32.mrb[16].mxu0 }
 0x7b3   : > { %v1557_v45 = vadd.f32 %v1737_v5, %v1556_v44  ;;  %v2015_v46 = vpop.f32.mrb[17].mxu0 }
 0x7b4   : > { %v1559_v47 = vpop.f32.mrb[18].mxu0 }
 0x7b5   : > { %1563 = vst [vmem:[%s448_s12] sm:$0xff] %v1557_v45  ;;  %v1560_v48 = vadd.f32 %v1737_v5, %v1559_v47  ;;  %v2016_v49 = vpop.f32.mrb[19].mxu0 }
 0x7b7   : > { %1564 = vst [vmem:[%s448_s12 + $0x8] sm:$0xff] %v1560_v48 }
 0x7b8   : > { %2284 = shalt.err (!%p2281_p4)
}
 0x7b9   : > { %s2285_s28 = scalar_lea.hbm %s2968_s15, 256  ;;  %s2289_s12 = scalar_lea.hbm %s3051_s22, 512 }
 0x7ba   : > { %p2286_p9 = scmp.ne.s32.totalorder %s2968_s15, %s2285_s28  ;;  %p2290_p8 = scmp.lt.u32.totalorder %s2968_s15, %s3051_s22 }
 0x7bb   : > { %p2291_p13 = scmp.lt.u32.totalorder %s2289_s12, %s2285_s28  ;;  %p2293_p10 = scmp.lt.u32.totalorder %s2285_s28, %s2968_s15 }
 0x7bc   : > { %p2287_p0 = pnand %p2286_p9, %p2579_p5 }
 0x7bd   : > { %p2292_p6 = por %p2291_p13, %p2290_p8 }
 0x7be   : > { %p2288_p11 = pneg %p2287_p0 }
 0x7bf   : > { %p2294_p3 = por %p2293_p10, %p2292_p6 }
 0x7c1   : > { %p2295_p7 = pnand %p2294_p3, %p2288_p11 }
 0x7c3   : > { %2298 = shalt.err (!%p2295_p7)
}
 0x7c4   : > { %s2363_s25 = smov 128   ;;  %s2364_s21 = smov 8  }
 0x7c5   : > { %2031 = dma.vmem_to_hbm [thread:$0]  (%p2579_p5), %s2963_s29, 256, %s2968_s15, %s1566_s16, %s2363_s25, %s2363_s25, %s2364_s21  }
 0x7c6 PF: > { %s3052_s14 = sld [smem:[#allocation15_spill]]  ;;  %s3053_s30 = sld [smem:[#allocation16_spill]] }
 0x7c7   : > { %p3055_p1 = scmp.ge.s32.totalorder %s2345_s20, 2 }
 0x7cc   : > { %s1594_s8 = sand.u32 1, %s3052_s14   ;;  %p3054_p12 = scmp.ne.s32.totalorder %s3053_s30, 0 }
 0x7cd   : > { %s1595_s28 = scalar_lea.sflag [#allocation4], %s1594_s8 }
 0x7ce   : > { %p2048_p2 = pnand %p3055_p1, %p3054_p12 }
 0x7d0   : > { %2328 = dma.done.wait (!%p2048_p2), %s1595_s28, 256  }
 0x7d1   : > { %2330 = vsyncadd (!%p2048_p2), %s1595_s28, 4294967040  ;;  %p26_p4 = scmp.ge.s32.totalorder %s2565_s24, 4   ;;  %s3056_s17 = smov %s2337_s18 }
 0x7d2   : > { %s3057_s18 = smov %s2341_s19  ;;  %s3058_s19 = smov %s2575_s11 }
 0x7d3   : > { %s3059_s20 = smov %s2565_s24  ;;  %28 = sbr.rel (!%p26_p4) target bundleno = 11 (0xb), region = 121 }
 0x7da   :  { %1600 = vsyncpa [#allocation3], 1 }
 0x7db   :  { %1602 = vsyncpa [#allocation3 + $0x1], 1 }
 0x7dc   :  { %1603 = vsyncpa [#allocation6], 1 }
 0x7dd   :  { %1604 = vsyncpa [#allocation9], 1 }
 0x7de   :  { %1605 = vsyncpa [#allocation4], 1 }
 0x7df   :  { %1607 = vsyncpa [#allocation4 + $0x1], 1 }

</bundles_post_ra>
